<compile_context>
chip_gen: v6e
topology: v6e:2x2x1
jax: 0.10.0
libtpu: 0.0.40
codegen_flags: <defaults>
</compile_context>

<pallas_src>
import functools

import jax
import jax.numpy as jnp
from jax import lax
from jax.experimental import pallas as pl
from jax.experimental.pallas import tpu as pltpu

_EPS = 1e-08
_LANES = 128


def _device_caps():
    """Returns (max_tile_rows, num_tensorcores) for the local TPU generation."""
    try:
        kind = jax.devices()[0].device_kind.lower()
    except Exception:
        kind = ""
    is_v5e = ("v5 lite" in kind) or ("v5e" in kind) or ("v5litepod" in kind)
    # v5e (~0.8 TB/s HBM): ~2 MiB/input tiles already saturate bandwidth and
    # stay well inside its default scoped-VMEM budget. v6e/v7x: 4 MiB tiles.
    max_tile_rows = 4096 if is_v5e else 8192
    num_tc = 2 if "v7" in kind else 1
    return max_tile_rows, num_tc


def _dice_sums_kernel(p_ref, t_ref, inter_ref, union_ref, *,
                      tiles_per_split, n_tiles, tile_rows, acc_rows,
                      valid_rows_last, ragged, has_padding_steps, unroll):
    k = pl.program_id(1)

    # Initialize this split's resident accumulators on its first tile.
    @pl.when(k == 0)
    def _():
        inter_ref[...] = jnp.zeros_like(inter_ref)
        union_ref[...] = jnp.zeros_like(union_ref)

    groups = tile_rows // acc_rows

    def accumulate(limit):
        # limit: None -> unmasked fast path; else int32 row bound (rows with
        # index >= limit are zeroed before the mul/add, so garbage in the
        # ragged DMA region never reaches the sums).
        def mask(p, t, row_off):
            if limit is None:
                return p, t
            rid = row_off + lax.broadcasted_iota(jnp.int32, p.shape, 0)
            keep = rid < limit
            return jnp.where(keep, p, 0.0), jnp.where(keep, t, 0.0)

        if groups == 1:
            p = p_ref[...].astype(jnp.float32)
            t = t_ref[...].astype(jnp.float32)
            p, t = mask(p, t, 0)
            inter_ref[...] += p * t
            union_ref[...] += p + t
        else:
            # groups > 1  =>  acc_rows in {8, 64} and divides tile_rows.
            def body(g, carry):
                ia, ua = carry
                off = pl.multiple_of(g * acc_rows, acc_rows)
                p = p_ref[pl.ds(off, acc_rows), :].astype(jnp.float32)
                t = t_ref[pl.ds(off, acc_rows), :].astype(jnp.float32)
                p, t = mask(p, t, off)
                return ia + p * t, ua + (p + t)

            ia0 = jnp.zeros((acc_rows, _LANES), jnp.float32)
            ua0 = jnp.zeros((acc_rows, _LANES), jnp.float32)
            ia, ua = lax.fori_loop(0, groups, body, (ia0, ua0), unroll=unroll)
            inter_ref[...] += ia
            union_ref[...] += ua

    if not (ragged or has_padding_steps):
        # Every tile is full: pure unmasked streaming path.
        accumulate(None)
    else:
        s = pl.program_id(0)
        g = s * tiles_per_split + k            # global tile index (unclamped)
        edge_start = n_tiles - 1 if ragged else n_tiles

        @pl.when(g < edge_start)
        def _():
            accumulate(None)

        @pl.when(g >= edge_start)
        def _():
            # Ragged last tile uses its true row count; grid-padding steps
            # (g >= n_tiles) contribute nothing.
            limit = jnp.where(g >= n_tiles, 0, valid_rows_last)
            accumulate(limit)


def _dice_sums(p_2d, t_2d):
    rows = p_2d.shape[0]
    itemsize = jnp.dtype(p_2d.dtype).itemsize
    max_tile_rows, num_tc = _device_caps()

    # Tile rows: multiple of 512 when multiple tiles are needed (satisfies
    # every dtype's sublane packing); a single full-extent tile otherwise.
    if rows <= 512:
        tile_rows = rows
    else:
        tile_rows = min(max_tile_rows, (rows // 512) * 512)

    n_tiles = -(-rows // tile_rows)
    valid_rows_last = rows - (n_tiles - 1) * tile_rows
    ragged = valid_rows_last != tile_rows

    # Megacore split: only on 2-TC chips, and only when it is free of wasted
    # padding steps (or the single padded step is negligible).
    if num_tc > 1 and n_tiles >= 2 and (n_tiles % 2 == 0 or n_tiles >= 9):
        n_splits = 2
    else:
        n_splits = 1
    tiles_per_split = -(-n_tiles // n_splits)
    has_padding_steps = n_splits * tiles_per_split != n_tiles

    # Wide resident accumulators shorten the per-tile reduce chain.
    if tile_rows % 64 == 0:
        acc_rows = 64
    elif tile_rows % 8 == 0:
        acc_rows = 8
    else:
        acc_rows = tile_rows        # tiny / odd single-tile case
    groups = tile_rows // acc_rows
    if groups >= 4 and groups % 4 == 0:
        unroll = 4
    elif groups >= 2 and groups % 2 == 0:
        unroll = 2
    else:
        unroll = 1

    def in_index_map(s, k):
        g = s * tiles_per_split + k
        if has_padding_steps:
            # Clamp the (rare) padded step onto the last real tile; its
            # contribution is zeroed in-kernel. Keeps every DMA in-bounds.
            g = jnp.minimum(g, n_tiles - 1)
        return (g, 0)

    tile_spec = pl.BlockSpec((tile_rows, _LANES), in_index_map)
    out_spec = pl.BlockSpec((None, acc_rows, _LANES), lambda s, k: (s, 0, 0))

    kernel = functools.partial(
        _dice_sums_kernel,
        tiles_per_split=tiles_per_split,
        n_tiles=n_tiles,
        tile_rows=tile_rows,
        acc_rows=acc_rows,
        valid_rows_last=valid_rows_last,
        ragged=ragged,
        has_padding_steps=has_padding_steps,
        unroll=unroll,
    )

    # VMEM budget: 2 inputs x 2 pipeline buffers x tile + 2 outputs x 2
    # buffers x accumulator, plus headroom. Stays under v7x's 64 MiB.
    tile_bytes = tile_rows * _LANES * itemsize
    acc_bytes = acc_rows * _LANES * 4
    vmem_needed = 4 * tile_bytes + 4 * acc_bytes + (2 << 20)
    vmem_limit = int(min(max(vmem_needed, 24 << 20), 48 << 20))

    n_elems = rows * _LANES
    cost = pl.CostEstimate(
        flops=int(3 * n_elems),
        transcendentals=0,
        bytes_accessed=int(2 * n_elems * itemsize + 2 * n_splits * acc_bytes),
    )

    inter, union = pl.pallas_call(
        kernel,
        out_shape=(
            jax.ShapeDtypeStruct((n_splits, acc_rows, _LANES), jnp.float32),
            jax.ShapeDtypeStruct((n_splits, acc_rows, _LANES), jnp.float32),
        ),
        grid_spec=pltpu.PrefetchScalarGridSpec(
            num_scalar_prefetch=0,
            grid=(n_splits, tiles_per_split),
            in_specs=[tile_spec, tile_spec],
            out_specs=[out_spec, out_spec],
        ),
        compiler_params=pltpu.CompilerParams(
            dimension_semantics=("parallel", "arbitrary"),
            vmem_limit_bytes=vmem_limit,
        ),
        cost_estimate=cost,
    )(p_2d, t_2d)
    return inter, union


def dice_loss(predict, target):
    """DiceLoss.forward: 1 - 2*(sum(p*t)+eps)/(sum(p+t)+eps), scalar output."""
    assert predict.shape == target.shape, (
        "the size of predict and target must be equal."
    )
    # Flatten; keep native dtype (the kernel upcasts to f32 inside VMEM).
    p_flat = predict.reshape(-1)
    t_flat = target.reshape(-1)
    total = p_flat.shape[0]

    # Only pad when the size is not a multiple of 128 lanes (rare for NCHW
    # segmentation maps); zero padding leaves both sums unchanged. Ragged
    # last tiles w.r.t. tile_rows are handled in-kernel with a row mask.
    pad = (-total) % _LANES
    if pad:
        p_flat = jnp.pad(p_flat, (0, pad))
        t_flat = jnp.pad(t_flat, (0, pad))

    rows = (total + pad) // _LANES
    p_2d = p_flat.reshape(rows, _LANES)
    t_2d = t_flat.reshape(rows, _LANES)

    inter_parts, union_parts = _dice_sums(p_2d, t_2d)
    intersection = jnp.sum(inter_parts, dtype=jnp.float32)
    union = jnp.sum(union_parts, dtype=jnp.float32)
    return 1.0 - 2.0 * (intersection + _EPS) / (union + _EPS)


if __name__ == "__main__":
    key = jax.random.PRNGKey(0)
    k1, k2 = jax.random.split(key)
    # Small shapes consistent with a segmentation output: (N, C, H, W).
    x_shape = (2, 4, 16, 16)
    predict = jax.nn.sigmoid(jax.random.normal(k1, x_shape, dtype=jnp.float32))
    target = (jax.random.uniform(k2, x_shape) > 0.5).astype(jnp.float32)

    loss = jax.jit(dice_loss)(predict, target)
    loss = jax.block_until_ready(loss)

    # Pure-JAX reference check (mirrors the PyTorch forward).
    n = x_shape[0]
    pre = predict.reshape(n, -1)
    tar = target.reshape(n, -1)
    inter_ref = (pre * tar).sum(-1).sum()
    union_ref = (pre + tar).sum(-1).sum()
    ref = 1.0 - 2.0 * (inter_ref + _EPS) / (union_ref + _EPS)
    assert jnp.allclose(loss, ref, rtol=1e-5, atol=1e-6), (loss, ref)

    print("KERNEL_OK")
</pallas_src>

<mosaic_0001>
module attributes {stable_mosaic.version = 11 : i64} {
  func.func @_dice_sums_kernel(%arg0: i32, %arg1: i32, %arg2: memref<16x128xf32, #tpu.memory_space<vmem>>, %arg3: memref<16x128xf32, #tpu.memory_space<vmem>>, %arg4: memref<1x8x128xf32, #tpu.memory_space<vmem>>, %arg5: memref<1x8x128xf32, #tpu.memory_space<vmem>>) attributes {dimension_semantics = [#tpu.dimension_semantics<parallel>, #tpu.dimension_semantics<arbitrary>], iteration_bounds = array<i64: 1, 1>, scalar_prefetch = 0 : i64, scratch_operands = 0 : i64, tpu.core_type = #tpu.core_type<tc>, window_params = [{transform_indices = @transform_0, window_bounds = array<i64: 16, 128>}, {transform_indices = @transform_1, window_bounds = array<i64: 16, 128>}, {transform_indices = @transform_2, window_bounds = array<i64: 1, 8, 128>}, {transform_indices = @transform_3, window_bounds = array<i64: 1, 8, 128>}]} {
    %c0_i32 = arith.constant 0 : i32
    %0 = arith.cmpi eq, %arg1, %c0_i32 : i32
    %1 = arith.extui %0 : i1 to i32
    %c0_i32_0 = arith.constant 0 : i32
    %2 = arith.cmpi ne, %1, %c0_i32_0 : i32
    scf.if %2 {
      %cst_19 = arith.constant 0.000000e+00 : f32
      %37 = vector.broadcast %cst_19 : f32 to vector<8x128xf32>
      %c0_20 = arith.constant 0 : index
      %c0_21 = arith.constant 0 : index
      %c0_22 = arith.constant 0 : index
      %38 = vector.load %arg4[%c0_20, %c0_21, %c0_22] : memref<1x8x128xf32, #tpu.memory_space<vmem>>, vector<1x8x128xf32>
      %39 = vector.shape_cast %38 : vector<1x8x128xf32> to vector<8x128xf32>
      %40 = vector.shape_cast %37 : vector<8x128xf32> to vector<1x8x128xf32>
      tpu.vector_store %arg4[%c0_20, %c0_21, %c0_22], %40 {strides = array<i32>} : memref<1x8x128xf32, #tpu.memory_space<vmem>>, vector<1x8x128xf32>,
      %cst_23 = arith.constant 0.000000e+00 : f32
      %41 = vector.broadcast %cst_23 : f32 to vector<8x128xf32>
      %c0_24 = arith.constant 0 : index
      %c0_25 = arith.constant 0 : index
      %c0_26 = arith.constant 0 : index
      %42 = vector.load %arg5[%c0_24, %c0_25, %c0_26] : memref<1x8x128xf32, #tpu.memory_space<vmem>>, vector<1x8x128xf32>
      %43 = vector.shape_cast %42 : vector<1x8x128xf32> to vector<8x128xf32>
      %44 = vector.shape_cast %41 : vector<8x128xf32> to vector<1x8x128xf32>
      tpu.vector_store %arg5[%c0_24, %c0_25, %c0_26], %44 {strides = array<i32>} : memref<1x8x128xf32, #tpu.memory_space<vmem>>, vector<1x8x128xf32>,
    } else {
    }
    %cst = arith.constant 0.000000e+00 : f32
    %3 = vector.broadcast %cst : f32 to vector<8x128xf32>
    %cst_1 = arith.constant 0.000000e+00 : f32
    %4 = vector.broadcast %cst_1 : f32 to vector<8x128xf32>
    %c0_i32_2 = arith.constant 0 : i32
    %c8_i32 = arith.constant 8 : i32
    %5 = arith.muli %c0_i32_2, %c8_i32 : i32
    %6 = tpu.assume_multiple %5, 8 : i32
    %7 = arith.index_cast %6 : i32 to index
    %c0 = arith.constant 0 : index
    %8 = vector.load %arg2[%7, %c0] : memref<16x128xf32, #tpu.memory_space<vmem>>, vector<8x128xf32>
    %9 = arith.index_cast %6 : i32 to index
    %c0_3 = arith.constant 0 : index
    %10 = vector.load %arg3[%9, %c0_3] : memref<16x128xf32, #tpu.memory_space<vmem>>, vector<8x128xf32>
    %11 = arith.mulf %8, %10 : vector<8x128xf32>
    %12 = arith.addf %3, %11 : vector<8x128xf32>
    %13 = arith.addf %8, %10 : vector<8x128xf32>
    %14 = arith.addf %4, %13 : vector<8x128xf32>
    %c1_i32 = arith.constant 1 : i32
    %c8_i32_4 = arith.constant 8 : i32
    %15 = arith.muli %c1_i32, %c8_i32_4 : i32
    %16 = tpu.assume_multiple %15, 8 : i32
    %17 = arith.index_cast %16 : i32 to index
    %c0_5 = arith.constant 0 : index
    %18 = vector.load %arg2[%17, %c0_5] : memref<16x128xf32, #tpu.memory_space<vmem>>, vector<8x128xf32>
    %19 = arith.index_cast %16 : i32 to index
    %c0_6 = arith.constant 0 : index
    %20 = vector.load %arg3[%19, %c0_6] : memref<16x128xf32, #tpu.memory_space<vmem>>, vector<8x128xf32>
    %21 = arith.mulf %18, %20 : vector<8x128xf32>
    %22 = arith.addf %12, %21 : vector<8x128xf32>
    %23 = arith.addf %18, %20 : vector<8x128xf32>
    %24 = arith.addf %14, %23 : vector<8x128xf32>
    %c2_i32 = arith.constant 2 : i32
    %c0_7 = arith.constant 0 : index
    %c0_8 = arith.constant 0 : index
    %c0_9 = arith.constant 0 : index
    %25 = vector.load %arg4[%c0_7, %c0_8, %c0_9] : memref<1x8x128xf32, #tpu.memory_space<vmem>>, vector<1x8x128xf32>
    %26 = vector.shape_cast %25 : vector<1x8x128xf32> to vector<8x128xf32>
    %27 = arith.addf %26, %22 : vector<8x128xf32>
    %c0_10 = arith.constant 0 : index
    %c0_11 = arith.constant 0 : index
    %c0_12 = arith.constant 0 : index
    %28 = vector.load %arg4[%c0_10, %c0_11, %c0_12] : memref<1x8x128xf32, #tpu.memory_space<vmem>>, vector<1x8x128xf32>
    %29 = vector.shape_cast %28 : vector<1x8x128xf32> to vector<8x128xf32>
    %30 = vector.shape_cast %27 : vector<8x128xf32> to vector<1x8x128xf32>
    tpu.vector_store %arg4[%c0_10, %c0_11, %c0_12], %30 {strides = array<i32>} : memref<1x8x128xf32, #tpu.memory_space<vmem>>, vector<1x8x128xf32>,
    %c0_13 = arith.constant 0 : index
    %c0_14 = arith.constant 0 : index
    %c0_15 = arith.constant 0 : index
    %31 = vector.load %arg5[%c0_13, %c0_14, %c0_15] : memref<1x8x128xf32, #tpu.memory_space<vmem>>, vector<1x8x128xf32>
    %32 = vector.shape_cast %31 : vector<1x8x128xf32> to vector<8x128xf32>
    %33 = arith.addf %32, %24 : vector<8x128xf32>
    %c0_16 = arith.constant 0 : index
    %c0_17 = arith.constant 0 : index
    %c0_18 = arith.constant 0 : index
    %34 = vector.load %arg5[%c0_16, %c0_17, %c0_18] : memref<1x8x128xf32, #tpu.memory_space<vmem>>, vector<1x8x128xf32>
    %35 = vector.shape_cast %34 : vector<1x8x128xf32> to vector<8x128xf32>
    %36 = vector.shape_cast %33 : vector<8x128xf32> to vector<1x8x128xf32>
    tpu.vector_store %arg5[%c0_16, %c0_17, %c0_18], %36 {strides = array<i32>} : memref<1x8x128xf32, #tpu.memory_space<vmem>>, vector<1x8x128xf32>,
    return
  }
  func.func @transform_0(%arg0: i32, %arg1: i32) -> (i32, i32) {
    %c1_i32 = arith.constant 1 : i32
    %0 = arith.muli %arg0, %c1_i32 : i32
    %1 = arith.addi %0, %arg1 : i32
    %c0_i32 = arith.constant 0 : i32
    %c0_i32_0 = arith.constant 0 : i32
    return %1, %c0_i32 : i32, i32
  }
  func.func @transform_1(%arg0: i32, %arg1: i32) -> (i32, i32) {
    %c1_i32 = arith.constant 1 : i32
    %0 = arith.muli %arg0, %c1_i32 : i32
    %1 = arith.addi %0, %arg1 : i32
    %c0_i32 = arith.constant 0 : i32
    %c0_i32_0 = arith.constant 0 : i32
    return %1, %c0_i32 : i32, i32
  }
  func.func @transform_2(%arg0: i32, %arg1: i32) -> (i32, i32, i32) {
    %c0_i32 = arith.constant 0 : i32
    %c0_i32_0 = arith.constant 0 : i32
    %c0_i32_1 = arith.constant 0 : i32
    return %arg0, %c0_i32, %c0_i32_0 : i32, i32, i32
  }
  func.func @transform_3(%arg0: i32, %arg1: i32) -> (i32, i32, i32) {
    %c0_i32 = arith.constant 0 : i32
    %c0_i32_0 = arith.constant 0 : i32
    %c0_i32_1 = arith.constant 0 : i32
    return %arg0, %c0_i32, %c0_i32_0 : i32, i32, i32
  }
}

</mosaic_0001>

<bundles_post_ra>
// kernel: dice_loss.1
= control target key start
LH: loop header
LB: loop body
LE: loop exit
PB: predicated region body
PF: predicated region fallthrough
CT: control target
= control target key end

     0   :  { %s144_s0 = inlined_call_operand.vmem [shape: f32[16,128], index: 0, kind: input, shape index: {}]   ;;  %s145_s1 = inlined_call_operand.vmem [shape: f32[16,128], index: 1, kind: input, shape index: {}]   ;;  %s146_s2 = inlined_call_operand.vmem [shape: f32[1,8,128], index: 2, kind: output, shape index: {0}]   ;;  %s147_s3 = inlined_call_operand.vmem [shape: f32[1,8,128], index: 3, kind: output, shape index: {1}]  }
   0x1   :  { %v63_v0 = vld [vmem:[%s144_s0] sm:$0xff]  ;;  %v103_v2 = vld [vmem:[%s144_s0 + $0x8] sm:$0xff] }
   0x2   :  { %v64_v1 = vld [vmem:[%s145_s1] sm:$0xff]  ;;  %v104_v4 = vld [vmem:[%s145_s1 + $0x8] sm:$0xff] }
   0x3   :  { %v65_v3 = vmul.f32 %v64_v1, %v63_v0  ;;  %v67_v5 = vadd.f32 %v64_v1, %v63_v0  ;;  %v73_v6 = vmul.f32 %v104_v4, %v103_v2  ;;  %v75_v7 = vadd.f32 %v104_v4, %v103_v2 }
   0x5   :  { %v74_v8 = vadd.f32 %v73_v6, %v65_v3  ;;  %v76_v9 = vadd.f32 %v75_v7, %v67_v5 }
   0x7   :  { %79 = vst [vmem:[%s146_s2] sm:$0xff] %v74_v8  ;;  %82 = vst [vmem:[%s147_s3] sm:$0xff] %v76_v9 }

</bundles_post_ra>
